<compile_context>
chip_gen: v6e
topology: v6e:2x2x1
jax: 0.10.0
libtpu: 0.0.40
codegen_flags: <defaults>
</compile_context>

<pallas_src>
import jax
import jax.numpy as jnp
from jax.experimental import pallas as pl
from jax.experimental.pallas import tpu as pltpu

_LANE = 128
_MAX_ROW_BLOCK = 4096   # (4096,128) f32 = 2 MiB/block; safe on v5e/v6e/v7x defaults
_CHUNK = 512            # rows per inner fori_loop iteration (multiple of 8/16/32)


def _make_dice_kernel(steps, row_block, chunk, n_valid):
    """Statically specialized kernel factory.

    Per grid step (b, i) the kernel sees:
      x_ref: (row_block, 128) foreground logits (native dtype)
      t_ref: (row_block, 128) targets          (native dtype)
      o_ref: (24, 128) f32 per-batch accumulator block (resident across i):
             rows 0..7 = sum(p*t), rows 8..15 = sum(p), rows 16..23 = sum(t)
    """
    n_chunks = row_block // chunk
    lane_ragged = (n_valid % _LANE) != 0
    # Mask needed if the last lane-row is partial, or if the grid overshoots the
    # array (partial boundary block -> unspecified values in the pad region).
    need_mask = lane_ragged or (steps * row_block * _LANE > n_valid)

    def kernel(x_ref, t_ref, o_ref):
        i = pl.program_id(1)

        @pl.when(i == 0)
        def _init():
            o_ref[...] = jnp.zeros_like(o_ref)

        def accumulate(x, t, row0):
            rows_here = x.shape[0]
            x = x.astype(jnp.float32)
            t = t.astype(jnp.float32)
            # sigmoid(x) = 1 / (1 + exp(-x)); approx reciprocal runs on the EUP
            # slot (rel. err ~1e-4) instead of adding VPU Newton refinement.
            p = pl.reciprocal(1.0 + jnp.exp(-x), approx=True)
            if need_mask:
                row_ids = row0 + jax.lax.broadcasted_iota(
                    jnp.int32, (rows_here, _LANE), 0)
                if lane_ragged:
                    flat = row_ids * _LANE + jax.lax.broadcasted_iota(
                        jnp.int32, (rows_here, _LANE), 1)
                    valid = flat < n_valid
                else:
                    valid = row_ids < (n_valid // _LANE)
                # jnp.where (not multiply) so NaN/Inf garbage cannot leak through.
                p = jnp.where(valid, p, 0.0)
                t = jnp.where(valid, t, 0.0)
            pt = p * t
            if rows_here % 8 == 0:
                g = rows_here // 8
                # Reduce (rows_here,128) -> (8,128) by summing whole vregs (VPU
                # only, no XLU); the += below are full-vreg RMWs (no masked
                # sub-row vst.msk stores).
                o_ref[0:8, :] += pt.reshape(g, 8, _LANE).sum(axis=0)
                o_ref[8:16, :] += p.reshape(g, 8, _LANE).sum(axis=0)
                o_ref[16:24, :] += t.reshape(g, 8, _LANE).sum(axis=0)
            else:
                # Degenerate tiny blocks (< 8 rows): sublane reduce + sub-row RMW.
                o_ref[0:1, :] += jnp.sum(pt, axis=0, keepdims=True)
                o_ref[8:9, :] += jnp.sum(p, axis=0, keepdims=True)
                o_ref[16:17, :] += jnp.sum(t, axis=0, keepdims=True)

        if n_chunks == 1:
            accumulate(x_ref[...], t_ref[...], i * row_block)
        else:
            def body(c, carry):
                start = pl.multiple_of(c * chunk, chunk)
                accumulate(x_ref[pl.ds(start, chunk), :],
                           t_ref[pl.ds(start, chunk), :],
                           i * row_block + start)
                return carry

            jax.lax.fori_loop(0, n_chunks, body, 0, unroll=True)

    return kernel


def _channel_index_map(channel):
    def index_map(b, i):
        return (b, channel, i, 0)
    return index_map


def _dice_partial_sums(x4, t3, channel, n_valid):
    """Run the kernel over x4=(B, C, rows, 128) logits and t3=(B, rows, 128) targets.

    Returns (B, 24, 128) f32 per-batch per-lane partial sums.
    """
    bsz, _, rows, lane = x4.shape
    assert lane == _LANE and t3.shape == (bsz, rows, _LANE)

    if rows <= _MAX_ROW_BLOCK:
        row_block, steps = rows, 1
    else:
        row_block = _MAX_ROW_BLOCK
        steps = pl.cdiv(rows, row_block)
    chunk = _CHUNK if row_block % _CHUNK == 0 else row_block

    kernel = _make_dice_kernel(steps, row_block, chunk, n_valid)

    x_spec = pl.BlockSpec(
        (pl.Squeezed(), pl.Squeezed(), row_block, _LANE),
        _channel_index_map(channel))                    # channel select, no slice copy
    t_spec = pl.BlockSpec(
        (pl.Squeezed(), row_block, _LANE),
        lambda b, i: (b, i, 0))
    o_spec = pl.BlockSpec(
        (pl.Squeezed(), 3 * 8, _LANE),
        lambda b, i: (b, 0, 0))                         # resident accumulator block

    return pl.pallas_call(
        kernel,
        out_shape=jax.ShapeDtypeStruct((bsz, 3 * 8, _LANE), jnp.float32),
        grid_spec=pltpu.PrefetchScalarGridSpec(
            num_scalar_prefetch=0,
            grid=(bsz, steps),
            in_specs=[x_spec, t_spec],
            out_specs=o_spec,
        ),
        compiler_params=pltpu.CompilerParams(
            dimension_semantics=("parallel", "arbitrary")),
    )(x4, t3)


def dice_loss(inputs, targets, smooth=1e-6, reduction="mean"):
    """Pallas implementation of DiceLoss.forward.

    inputs:  [B, 2, H, W] logits (any float dtype)
    targets: [B, H, W]    labels in {0, 1} (any numeric/bool dtype)
    """
    bsz, _, h, w = inputs.shape
    hw = h * w
    if targets.dtype == jnp.bool_:
        targets = targets.astype(jnp.int8)   # keep the target stream at 1 B/elem

    if hw % _LANE == 0:
        # Fast path: free reshapes only - the kernel reads the foreground channel
        # and the native-dtype targets straight out of the original HBM buffers
        # (no slice copy, no pad pass, no wrapper cast).
        rows = hw // _LANE
        x4 = inputs.reshape(bsz, 2, rows, _LANE)
        t3 = targets.reshape(bsz, rows, _LANE)
        partials = _dice_partial_sums(x4, t3, channel=1, n_valid=hw)
    else:
        # TODO(synk): a lane-ragged W could be streamed in place with a
        # (Squeezed, Squeezed, H_block, W) BlockSpec; fall back to a slice+pad
        # staging pass (one extra HBM pass) for non-128-aligned H*W.
        n = bsz * hw
        rows = (n + _LANE - 1) // _LANE
        pad = rows * _LANE - n
        xf = jnp.pad(inputs[:, 1, :, :].reshape(-1), (0, pad))
        tf = jnp.pad(targets.reshape(-1), (0, pad))
        partials = _dice_partial_sums(xf.reshape(1, 1, rows, _LANE),
                                      tf.reshape(1, rows, _LANE),
                                      channel=0, n_valid=n)

    intersection = jnp.sum(partials[:, 0:8, :])
    p_sum = jnp.sum(partials[:, 8:16, :])
    t_sum = jnp.sum(partials[:, 16:24, :])
    dice_coeff = (2.0 * intersection + smooth) / (p_sum + t_sum + smooth)
    loss = 1.0 - dice_coeff
    # Loss is already a scalar; 'mean' / 'sum' / 'none' of a 0-d value are all the
    # same scalar, matching the reference nn.Module.
    del reduction
    return loss


def _dice_ref(inputs, targets, smooth=1e-6):
    p = jax.nn.sigmoid(inputs[:, 1, :, :].astype(jnp.float32)).reshape(-1)
    t = targets.reshape(-1).astype(jnp.float32)
    inter = jnp.sum(p * t)
    union = jnp.sum(p) + jnp.sum(t)
    return 1.0 - (2.0 * inter + smooth) / (union + smooth)


if __name__ == "__main__":
    key = jax.random.PRNGKey(0)

    def check(shape, logit_dtype, label_dtype, k):
        b, c, h, w = shape
        k1, k2 = jax.random.split(k)
        logits = jax.random.normal(k1, (b, c, h, w), dtype=jnp.float32).astype(logit_dtype)
        labels = (jax.random.uniform(k2, (b, h, w)) > 0.5).astype(label_dtype)
        loss = jax.block_until_ready(dice_loss(logits, labels))
        ref = _dice_ref(logits, labels)
        # approx-reciprocal sigmoid introduces ~1e-4 relative error in the loss.
        assert jnp.allclose(loss, ref, atol=2e-3, rtol=2e-3), (shape, loss, ref)

    k0, k1, k2 = jax.random.split(key, 3)
    # Small demo shape consistent with the module: [B, 2, H, W] logits, [B, H, W] labels.
    check((2, 2, 16, 16), jnp.float32, jnp.int32, k0)
    # Tiled path: rows = 8192 -> two 4096-row blocks, 512-row unrolled chunks,
    # bf16 logits + int8 labels streamed in their native dtypes.
    check((1, 2, 1024, 1024), jnp.bfloat16, jnp.int8, k1)
    # Non-128-aligned H*W -> slow path with in-kernel lane masking.
    check((1, 2, 10, 12), jnp.float32, jnp.int32, k2)

    print("KERNEL_OK")
</pallas_src>

<mosaic_0001>
module attributes {stable_mosaic.version = 11 : i64} {
  func.func @kernel(%arg0: i32, %arg1: i32, %arg2: memref<1x1x2x128xf32, #tpu.memory_space<vmem>>, %arg3: memref<1x2x128xi32, #tpu.memory_space<vmem>>, %arg4: memref<1x24x128xf32, #tpu.memory_space<vmem>>) attributes {dimension_semantics = [#tpu.dimension_semantics<parallel>, #tpu.dimension_semantics<arbitrary>], iteration_bounds = array<i64: 2, 1>, scalar_prefetch = 0 : i64, scratch_operands = 0 : i64, tpu.core_type = #tpu.core_type<tc>, window_params = [{transform_indices = @transform_0, window_bounds = array<i64: 1, 1, 2, 128>}, {transform_indices = @transform_1, window_bounds = array<i64: 1, 2, 128>}, {transform_indices = @transform_2, window_bounds = array<i64: 1, 24, 128>}]} {
    %c0_i32 = arith.constant 0 : i32
    %0 = arith.cmpi eq, %arg1, %c0_i32 : i32
    %1 = arith.extui %0 : i1 to i32
    %c0_i32_0 = arith.constant 0 : i32
    %2 = arith.cmpi ne, %1, %c0_i32_0 : i32
    scf.if %2 {
      %cst_27 = arith.constant 0.000000e+00 : f32
      %39 = vector.broadcast %cst_27 : f32 to vector<24x128xf32>
      %c0_28 = arith.constant 0 : index
      %c0_29 = arith.constant 0 : index
      %c0_30 = arith.constant 0 : index
      %40 = vector.load %arg4[%c0_28, %c0_29, %c0_30] : memref<1x24x128xf32, #tpu.memory_space<vmem>>, vector<1x24x128xf32>
      %41 = vector.shape_cast %40 : vector<1x24x128xf32> to vector<24x128xf32>
      %42 = vector.shape_cast %39 : vector<24x128xf32> to vector<1x24x128xf32>
      tpu.vector_store %arg4[%c0_28, %c0_29, %c0_30], %42 {strides = array<i32>} : memref<1x24x128xf32, #tpu.memory_space<vmem>>, vector<1x24x128xf32>,
    } else {
    }
    %c0 = arith.constant 0 : index
    %c0_1 = arith.constant 0 : index
    %c0_2 = arith.constant 0 : index
    %c0_3 = arith.constant 0 : index
    %3 = vector.load %arg2[%c0, %c0_1, %c0_2, %c0_3] : memref<1x1x2x128xf32, #tpu.memory_space<vmem>>, vector<1x1x2x128xf32>
    %4 = vector.shape_cast %3 : vector<1x1x2x128xf32> to vector<2x128xf32>
    %c0_4 = arith.constant 0 : index
    %c0_5 = arith.constant 0 : index
    %c0_6 = arith.constant 0 : index
    %5 = vector.load %arg3[%c0_4, %c0_5, %c0_6] : memref<1x2x128xi32, #tpu.memory_space<vmem>>, vector<1x2x128xi32>
    %6 = vector.shape_cast %5 : vector<1x2x128xi32> to vector<2x128xi32>
    %7 = arith.sitofp %6 : vector<2x128xi32> to vector<2x128xf32>
    %cst = arith.constant 0.000000e+00 : f32
    %8 = vector.broadcast %cst : f32 to vector<2x128xf32>
    %9 = arith.subf %8, %4 : vector<2x128xf32>
    %10 = math.exp %9 : vector<2x128xf32>
    %cst_7 = arith.constant 1.000000e+00 : f32
    %11 = vector.broadcast %cst_7 : f32 to vector<2x128xf32>
    %12 = arith.addf %11, %10 : vector<2x128xf32>
    %13 = tpu.reciprocal %12 {approx = true} : vector<2x128xf32> -> vector<2x128xf32>
    %14 = arith.mulf %13, %7 : vector<2x128xf32>
    %c0_8 = arith.constant 0 : index
    %c0_9 = arith.constant 0 : index
    %c0_10 = arith.constant 0 : index
    %15 = vector.load %arg4[%c0_8, %c0_9, %c0_10] : memref<1x24x128xf32, #tpu.memory_space<vmem>>, vector<1x1x128xf32>
    %16 = vector.shape_cast %15 : vector<1x1x128xf32> to vector<1x128xf32>
    %cst_11 = arith.constant dense<0.000000e+00> : vector<128xf32>
    %17 = vector.multi_reduction <add>, %14, %cst_11 [0] : vector<2x128xf32> to vector<128xf32>
    %18 = vector.shape_cast %17 : vector<128xf32> to vector<1x128xf32>
    %19 = arith.addf %16, %18 : vector<1x128xf32>
    %c0_12 = arith.constant 0 : index
    %c0_13 = arith.constant 0 : index
    %c0_14 = arith.constant 0 : index
    %20 = vector.load %arg4[%c0_12, %c0_13, %c0_14] : memref<1x24x128xf32, #tpu.memory_space<vmem>>, vector<1x1x128xf32>
    %21 = vector.shape_cast %20 : vector<1x1x128xf32> to vector<1x128xf32>
    %22 = vector.shape_cast %19 : vector<1x128xf32> to vector<1x1x128xf32>
    tpu.vector_store %arg4[%c0_12, %c0_13, %c0_14], %22 {strides = array<i32>} : memref<1x24x128xf32, #tpu.memory_space<vmem>>, vector<1x1x128xf32>,
    %c0_15 = arith.constant 0 : index
    %c8 = arith.constant 8 : index
    %c0_16 = arith.constant 0 : index
    %23 = vector.load %arg4[%c0_15, %c8, %c0_16] : memref<1x24x128xf32, #tpu.memory_space<vmem>>, vector<1x1x128xf32>
    %24 = vector.shape_cast %23 : vector<1x1x128xf32> to vector<1x128xf32>
    %cst_17 = arith.constant dense<0.000000e+00> : vector<128xf32>
    %25 = vector.multi_reduction <add>, %13, %cst_17 [0] : vector<2x128xf32> to vector<128xf32>
    %26 = vector.shape_cast %25 : vector<128xf32> to vector<1x128xf32>
    %27 = arith.addf %24, %26 : vector<1x128xf32>
    %c0_18 = arith.constant 0 : index
    %c8_19 = arith.constant 8 : index
    %c0_20 = arith.constant 0 : index
    %28 = vector.load %arg4[%c0_18, %c8_19, %c0_20] : memref<1x24x128xf32, #tpu.memory_space<vmem>>, vector<1x1x128xf32>
    %29 = vector.shape_cast %28 : vector<1x1x128xf32> to vector<1x128xf32>
    %30 = vector.shape_cast %27 : vector<1x128xf32> to vector<1x1x128xf32>
    tpu.vector_store %arg4[%c0_18, %c8_19, %c0_20], %30 {strides = array<i32>} : memref<1x24x128xf32, #tpu.memory_space<vmem>>, vector<1x1x128xf32>,
    %c0_21 = arith.constant 0 : index
    %c16 = arith.constant 16 : index
    %c0_22 = arith.constant 0 : index
    %31 = vector.load %arg4[%c0_21, %c16, %c0_22] : memref<1x24x128xf32, #tpu.memory_space<vmem>>, vector<1x1x128xf32>
    %32 = vector.shape_cast %31 : vector<1x1x128xf32> to vector<1x128xf32>
    %cst_23 = arith.constant dense<0.000000e+00> : vector<128xf32>
    %33 = vector.multi_reduction <add>, %7, %cst_23 [0] : vector<2x128xf32> to vector<128xf32>
    %34 = vector.shape_cast %33 : vector<128xf32> to vector<1x128xf32>
    %35 = arith.addf %32, %34 : vector<1x128xf32>
    %c0_24 = arith.constant 0 : index
    %c16_25 = arith.constant 16 : index
    %c0_26 = arith.constant 0 : index
    %36 = vector.load %arg4[%c0_24, %c16_25, %c0_26] : memref<1x24x128xf32, #tpu.memory_space<vmem>>, vector<1x1x128xf32>
    %37 = vector.shape_cast %36 : vector<1x1x128xf32> to vector<1x128xf32>
    %38 = vector.shape_cast %35 : vector<1x128xf32> to vector<1x1x128xf32>
    tpu.vector_store %arg4[%c0_24, %c16_25, %c0_26], %38 {strides = array<i32>} : memref<1x24x128xf32, #tpu.memory_space<vmem>>, vector<1x1x128xf32>,
    return
  }
  func.func @transform_0(%arg0: i32, %arg1: i32) -> (i32, i32, i32, i32) {
    %c1_i32 = arith.constant 1 : i32
    %c0_i32 = arith.constant 0 : i32
    %c0_i32_0 = arith.constant 0 : i32
    return %arg0, %c1_i32, %arg1, %c0_i32 : i32, i32, i32, i32
  }
  func.func @transform_1(%arg0: i32, %arg1: i32) -> (i32, i32, i32) {
    %c0_i32 = arith.constant 0 : i32
    %c0_i32_0 = arith.constant 0 : i32
    return %arg0, %arg1, %c0_i32 : i32, i32, i32
  }
  func.func @transform_2(%arg0: i32, %arg1: i32) -> (i32, i32, i32) {
    %c0_i32 = arith.constant 0 : i32
    %c0_i32_0 = arith.constant 0 : i32
    %c0_i32_1 = arith.constant 0 : i32
    return %arg0, %c0_i32, %c0_i32_0 : i32, i32, i32
  }
}

</mosaic_0001>

<bundles_post_ra>
// kernel: tpu_custom_call.1
= control target key start
LH: loop header
LB: loop body
LE: loop exit
PB: predicated region body
PF: predicated region fallthrough
CT: control target
= control target key end

     0   :  { %7 = vsyncpa [#allocation3], 0  ;;  %s837_s0 = inlined_call_operand.hbm [shape: f32[2,2,2,128], index: 0, kind: input, shape index: {}]   ;;  %s838_s1 = inlined_call_operand.hbm [shape: s32[2,2,128], index: 1, kind: input, shape index: {}]   ;;  %s839_s2 = inlined_call_operand.hbm [shape: f32[2,24,128], index: 2, kind: output, shape index: {}]  }
   0x1   :  { %9 = vsyncpa [#allocation3 + $0x1], 0 }
   0x2   :  { %10 = vsyncpa [#allocation6], 0 }
   0x3   :  { %12 = vsyncpa [#allocation6 + $0x1], 0 }
   0x4   :  { %13 = vsyncpa [#allocation4], 0 }
   0x5   :  { %15 = vsyncpa [#allocation4 + $0x1], 0  ;;  %s641_s9 = smov 0   ;;  %s643_s10 = smov 0  }
   0x6   :  { %s645_s11 = smov 0   ;;  %s647_s12 = smov 0  }
   0x7   :  { %s649_s13 = smov 0   ;;  %s651_s14 = smov 0  }
   0x8 LB: > { %s385_s15 = sadd.s32 4294967295, %s618_s14   ;;  %s386_s16 = sadd.s32 4294967294, %s618_s14   ;;  %s618_s14 = sphi %s651_s14, %s21_s14   ;;  %s614_s13 = sphi %s649_s13, %s851_s13   ;;  %s610_s12 = sphi %s647_s12, %s850_s12   ;;  %s606_s11 = sphi %s645_s11, %s849_s11   ;;  %s602_s10 = sphi %s643_s10, %s848_s10   ;;  %s598_s9 = sphi %s641_s9, %s847_s9  }
   0x9   : > { %s33_s17 = sadd.s32 1, %s614_s13  ;;  %s42_s18 = sadd.s32 1, %s606_s11 }
   0xa   : > { %p35_p0 = scmp.ge.s32.totalorder %s33_s17, 2  ;;  %p49_p1 = scmp.ne.s32.totalorder %s606_s11, %s602_s10 }
   0xb   : > { %p50_p2 = scmp.eq.s32.totalorder %s618_s14, 0  ;;  %p55_p3 = scmp.ne.s32.totalorder %s602_s10, %s598_s9 }
   0xc   : > { %s853_s17 = smov (%p35_p0, %s33_s17), 0  ;;  %p56_p5 = scmp.eq.s32.totalorder %s385_s15, 0 }
   0xd   : > { %p682_p4 = por %p50_p2, %p49_p1  ;;  %s37_s20 = ssub.s32 %s614_s13, %s853_s17 }
   0xe   : > { %p107_p6 = scmp.eq.s32.totalorder %s385_s15, 1  ;;  %p40_p7 = scmp.eq.s32.totalorder %s37_s20, 0 }
   0xf   : > { %p688_p8 = por %p56_p5, %p55_p3  ;;  %p113_p10 = scmp.eq.s32.totalorder %s386_s16, 1 }
  0x10   : > { %p692_p9 = por %p107_p6, %p49_p1  ;;  %p420_p13 = scmp.lt.s32.totalorder %s618_s14, 2 }
  0x11   : > { %s697_s23 = scalar_select %p40_p7, %s606_s11, %s42_s18  }
  0x12   : > { %p699_p11 = por %p113_p10, %p55_p3  ;;  %s706_s25 = sand.u32 1, %s606_s11  }
  0x13   : > { %s389_s26 = sshll.u32 %s706_s25, 1  ;;  %s400_s27 = sshll.u32 %s614_s13, 6 }
  0x14   : > { %s313_s30 = scalar_lea.hbm %s837_s0, %s400_s27  ;;  %s137_s3 = scalar_lea.vmem [#allocation2], %s389_s26 }
  0x15   : > { %s147_s4 = sshll.u32 %s137_s3, 4  ;;  %s314_s5 = scalar_lea.hbm %s313_s30, 32  ;;  %s148_s4 = int_to_ptr.vmem [resolvable:$true] %s147_s4 }
  0x16   : > { %p717_p0 = pnand %p420_p13, %p682_p4  ;;  %p394_p1 = scmp.ge.s32.totalorder %s618_s14, 1 }
  0x17   : > { %p171_p2 = scmp.lt.s32.totalorder %s618_s14, 3  ;;  %s134_s7 = scalar_lea.sflag [#allocation3], %s706_s25 }
  0x18   : > { %p479_p3 = pneg %p717_p0  ;;  %s490_s8 = scalar_lea.vmem %s148_s4, 32 }
  0x19   : > { %p491_p5 = scmp.ne.s32.totalorder %s148_s4, %s490_s8  ;;  %s620_s15 = smov [#allocation2]  }
  0x1a   : > { %s495_s16 = sshll.u32 %s620_s15, 4  ;;  %s496_s16 = int_to_ptr.vmem [resolvable:$false] %s495_s16 }
  0x1b   : > { %p493_p6 = pnand %p491_p5, %p479_p3  ;;  %s497_s18 = scalar_lea.vmem %s496_s16, 64 }
  0x1c   : > { %p498_p4 = scmp.lt.s32.totalorder %s148_s4, %s496_s16  ;;  %p499_p10 = scmp.lt.s32.totalorder %s497_s18, %s490_s8 }
  0x1d   : > { %p494_p7 = pneg %p493_p6 }
  0x1e   : > { %p500_p13 = por %p499_p10, %p498_p4 }
  0x20   : > { %p501_p12 = pnand %p500_p13, %p494_p7 }
  0x22   : > { %504 = shalt.err (!%p501_p12)
}
  0x23   : > { %412 = dma.hbm_to_vmem [thread:$0]  (!%p717_p0), %s314_s5, 32, %s148_s4, %s134_s7  }
  0x24   : > { %p735_p5 = pnand %p394_p1, %p171_p2  ;;  %s393_s20 = sshll.u32 %s614_s13, 5 }
  0x25   : > { %s164_s29 = scalar_lea.hbm %s838_s1, %s393_s20  ;;  %s158_s30 = scalar_lea.vmem [#allocation5], %s389_s26 }
  0x26   : > { %s166_s3 = sshll.u32 %s158_s30, 4  ;;  %s155_s8 = scalar_lea.sflag [#allocation6], %s706_s25  ;;  %s167_s3 = int_to_ptr.vmem [resolvable:$true] %s166_s3 }
  0x27   : > { %s519_s15 = scalar_lea.vmem %s167_s3, 32  ;;  %s621_s4 = smov [#allocation5]  }
  0x28   : > { %p520_p12 = scmp.ne.s32.totalorder %s167_s3, %s519_s15  ;;  %s524_s5 = sshll.u32 %s621_s4, 4  ;;  %s525_s5 = int_to_ptr.vmem [resolvable:$false] %s524_s5 }
  0x29   : > { %s526_s7 = scalar_lea.vmem %s525_s5, 64  ;;  %p527_p1 = scmp.lt.s32.totalorder %s167_s3, %s525_s5 }
  0x2a   : > { %p522_p6 = pnand %p520_p12, %p479_p3  ;;  %p528_p2 = scmp.lt.s32.totalorder %s526_s7, %s519_s15 }
  0x2c   : > { %p523_p7 = pneg %p522_p6  ;;  %p529_p4 = por %p528_p2, %p527_p1 }
  0x2e   : > { %p530_p10 = pnand %p529_p4, %p523_p7 }
  0x30   : > { %533 = shalt.err (!%p530_p10)
}
  0x31   : > { %415 = dma.hbm_to_vmem [thread:$0]  (!%p717_p0), %s164_s29, 32, %s167_s3, %s155_s8  }
  0x32   : > { %175 = sbr.rel (%p735_p5) target bundleno = 124 (0x7c), region = 28  ;;  %s754_s25 = sand.u32 (!%p735_p5), 1, %s602_s10  }
  0x33   : > { %s395_s26 = sshll.u32 (!%p735_p5), %s754_s25, 1  ;;  %s178_s16 = scalar_lea.sflag (!%p735_p5), [#allocation3], %s754_s25 }
  0x34   : > { %s181_s18 = scalar_lea.vmem (!%p735_p5), [#allocation2], %s395_s26 }
  0x37   : > { %585 = dma.done.wait (%p688_p8), %s178_s16, 32  }
  0x38   : > { %587 = vsyncadd (%p688_p8), %s178_s16, 4294967264  ;;  %s187_s6 = scalar_lea.sflag [#allocation6], %s754_s25  ;;  %s190_s20 = scalar_lea.vmem [#allocation5], %s395_s26 }
  0x39   : > { %589 = dma.done.wait (%p688_p8), %s187_s6, 32  }
  0x3a   : > { %591 = vsyncadd (%p688_p8), %s187_s6, 4294967264  ;;  %s401_s19 = smul.u32 24, %s754_s25  ;;  %v622_v0 = vmov 0.0   ;;  %v223_v1 = vld [vmem:[%s181_s18] sm:$0x3]  ;;  %vm233_vm0 = vcmask 1041408  }
  0x3b   : > { %v224_v2 = vld [vmem:[%s190_s20] sm:$0x3]  ;;  %v226_v3 = vsub.f32 0.0, %v223_v1  ;;  %s402_s21 = smul.u32 384, %s610_s12  ;;  %s264_s8 = scalar_lea.sflag [#allocation4], %s754_s25 }
  0x3c   : > { %s768_s27 = scalar_lea.vmem [#allocation7], %s401_s19  ;;  %v225_v4 = vcvt.s32.f32 %v224_v2  ;;  %s623_s12 = smov [#allocation7]  }
  0x3d   : > { %220 = vst [vmem:[%s768_s27] sm:$0xff] %v622_v0  ;;  %221 = vst [vmem:[%s768_s27 + $0x8] sm:$0xff] %v622_v0  ;;  %v227_v5 = vmul.f32 1.442695, %v226_v3  ;;  %s277_s28 = sshll.u32 %s768_s27, 4  ;;  %s786_s3 = scalar_lea.hbm %s839_s2, %s402_s21  ;;  %s788_s28 = int_to_ptr.vmem [resolvable:$true] %s277_s28 }
  0x3e   : > { %222 = vst [vmem:[%s768_s27 + $0x10] sm:$0xff] %v622_v0  ;;  %v254_v6 = vsel %vm233_vm0, %v225_v4, 0.0  ;;  %s534_s15 = scalar_lea.vmem %s788_s28, 384  ;;  %s538_s4 = sshll.u32 %s623_s12, 4  ;;  %s539_s4 = int_to_ptr.vmem [resolvable:$false] %s538_s4 }
  0x3f   : > { %473 = vpow2.f32 %v227_v5  ;;  %v255_v7 = vrot.slane %v254_v6, 4  ;;  %p535_p8 = scmp.ne.s32.totalorder %s788_s28, %s534_s15  ;;  %s540_s5 = scalar_lea.vmem %s539_s4, 768 }
  0x40   : > { %p541_p13 = scmp.lt.s32.totalorder %s788_s28, %s539_s4  ;;  %p542_p5 = scmp.lt.s32.totalorder %s540_s5, %s534_s15 }
  0x41   : > { %v256_v8 = vadd.f32 %v255_v7, %v254_v6  ;;  %p536_p0 = pnand %p535_p8, %p692_p9 }
  0x42   : > { %p543_p12 = por %p542_p5, %p541_p13 }
  0x43   : > { %v257_v9 = vrot.slane %v256_v8, 2  ;;  %p537_p3 = pneg %p536_p0 }
  0x44   : > { %v243_v30 = vld [vmem:[%s768_s27 + $0x8] sm:$0x1]  ;;  %v232_v33 = vld [vmem:[%s768_s27] sm:$0x1] }
  0x45   : > { %v258_v10 = vadd.f32 %v257_v9, %v256_v8  ;;  %v253_v12 = vld [vmem:[%s768_s27 + $0x10] sm:$0x1]  ;;  %p544_p6 = pnand %p543_p12, %p537_p3 }
  0x47   : > { %v259_v11 = vrot.slane %v258_v10, 1 }
  0x49   : > { %v260_v13 = vadd.f32 %v259_v11, %v258_v10 }
  0x4b   : > { %v261_v14 = vadd.f32 %v260_v13, %v253_v12 }
  0x4c   : > { %v474_v15 = vpop.eup %473 }
  0x4d   : > { %v229_v16 = vadd.f32 1.0, %v474_v15  ;;  %262 = vst [vmem:[%s768_s27 + $0x10] sm:$0x1] %v261_v14 }
  0x4f   : > { %475 = vrcp.f32 %v229_v16 }
  0x5c   : > { %v476_v17 = vpop.eup %475 }
  0x5d   : > { %v231_v18 = vmul.f32 %v476_v17, %v225_v4  ;;  %v244_v19 = vsel %vm233_vm0, %v476_v17, 0.0 }
  0x5e   : > { %v245_v20 = vrot.slane %v244_v19, 4 }
  0x5f   : > { %v234_v21 = vsel %vm233_vm0, %v231_v18, 0.0 }
  0x60   : > { %v235_v22 = vrot.slane %v234_v21, 4  ;;  %v246_v23 = vadd.f32 %v245_v20, %v244_v19 }
  0x62   : > { %v236_v24 = vadd.f32 %v235_v22, %v234_v21  ;;  %v247_v25 = vrot.slane %v246_v23, 2 }
  0x64   : > { %v237_v26 = vrot.slane %v236_v24, 2  ;;  %v248_v27 = vadd.f32 %v247_v25, %v246_v23 }
  0x66   : > { %v238_v28 = vadd.f32 %v237_v26, %v236_v24  ;;  %v249_v29 = vrot.slane %v248_v27, 1 }
  0x68   : > { %v239_v31 = vrot.slane %v238_v28, 1  ;;  %v250_v32 = vadd.f32 %v249_v29, %v248_v27 }
  0x6a   : > { %v240_v34 = vadd.f32 %v239_v31, %v238_v28  ;;  %v251_v35 = vadd.f32 %v250_v32, %v243_v30 }
  0x6c   : > { %v241_v36 = vadd.f32 %v240_v34, %v232_v33  ;;  %252 = vst [vmem:[%s768_s27 + $0x8] sm:$0x1] %v251_v35 }
  0x6e   : > { %242 = vst [vmem:[%s768_s27] sm:$0x1] %v241_v36 }
  0x6f   : > { %547 = shalt.err (!%p544_p6)
}
  0x70   : > { %s548_s7 = scalar_lea.hbm %s786_s3, 384  ;;  %s552_s18 = scalar_lea.hbm %s839_s2, 768 }
  0x71   : > { %p549_p7 = scmp.ne.s32.totalorder %s786_s3, %s548_s7  ;;  %p553_p4 = scmp.lt.s32.totalorder %s786_s3, %s839_s2 }
  0x72   : > { %p554_p10 = scmp.lt.s32.totalorder %s552_s18, %s548_s7 }
  0x73   : > { %p550_p1 = pnand %p549_p7, %p692_p9 }
  0x74   : > { %p555_p8 = por %p554_p10, %p553_p4 }
  0x75   : > { %p551_p2 = pneg %p550_p1 }
  0x77   : > { %p556_p0 = pnand %p555_p8, %p551_p2 }
  0x79   : > { %559 = shalt.err (!%p556_p0)
}
  0x7a   : > { %s624_s19 = smov 128   ;;  %s625_s27 = smov 8  }
  0x7b   : > { %407 = dma.vmem_to_hbm [thread:$0]  (%p692_p9), %s788_s28, 384, %s786_s3, %s264_s8, %s624_s19, %s624_s19, %s625_s27  }
  0x7c PF: > { %s292_s21 = sand.u32 1, %s598_s9   ;;  %p846_p3 = scmp.ge.s32.totalorder %s618_s14, 2 }
  0x7d   : > { %s293_s29 = scalar_lea.sflag [#allocation4], %s292_s21 }
  0x7e   : > { %p417_p13 = pnand %p846_p3, %p699_p11 }
  0x80   : > { %p418_p5 = pneg %p417_p13 }
  0x82   : > { %593 = dma.done.wait (%p418_p5), %s293_s29, 384  }
  0x83   : > { %595 = vsyncadd (%p418_p5), %s293_s29, 4294966912  ;;  %s21_s14 = sadd.s32 1, %s618_s14   ;;  %s847_s9 = smov %s602_s10 }
  0x84   : > { %p18_p12 = scmp.ge.s32.totalorder %s21_s14, 4   ;;  %s848_s10 = smov %s606_s11 }
  0x85   : > { %s849_s11 = smov %s697_s23  ;;  %s850_s12 = smov %s614_s13 }
  0x86   : > { %s851_s13 = smov %s853_s17  ;;  %20 = sbr.rel (!%p18_p12) target bundleno = 8 (0x8), region = 90 }
  0x8b   :  { %298 = vsyncpa [#allocation3], 1 }
  0x8c   :  { %300 = vsyncpa [#allocation3 + $0x1], 1 }
  0x8d   :  { %301 = vsyncpa [#allocation6], 1 }
  0x8e   :  { %303 = vsyncpa [#allocation6 + $0x1], 1 }
  0x8f   :  { %304 = vsyncpa [#allocation4], 1 }
  0x90   :  { %306 = vsyncpa [#allocation4 + $0x1], 1 }

</bundles_post_ra>
